<compile_context>
chip_gen: v5e
topology: v5e:2x2
jax: 0.10.0
libtpu: 0.0.40
codegen_flags: <defaults>
</compile_context>

<pallas_src>
import jax
import jax.numpy as jnp
from jax.experimental import pallas as pl
from jax.experimental.pallas import tpu as pltpu

# TODO(synk): `layers` (nn.ModuleList) has no concrete layer definition in the
#             provided module; the decoder layer stack is treated as identity,
#             so encoder_output / src_mask / tgt_mask are accepted but unused.

EPS = 1e-9


def _layernorm_kernel(x_ref, w_ref, b_ref, o_ref):
    # x_ref: (TM, D) tile; w_ref/b_ref: (1, D) resident blocks.
    x = x_ref[...].astype(jnp.float32)
    d = x.shape[-1]

    # Fused one-pass statistics: sum(x) and sum(x*x) in a single tile pass.
    s1 = jnp.sum(x, axis=-1, keepdims=True)
    s2 = jnp.sum(x * x, axis=-1, keepdims=True)
    mean = s1 * (1.0 / d)
    # torch.std uses Bessel's correction (ddof=1).
    var_unbiased = (s2 - d * (mean * mean)) * (1.0 / (d - 1))
    var_unbiased = jnp.maximum(var_unbiased, 0.0)  # guard fp cancellation
    std = jnp.sqrt(var_unbiased)

    # EUP approximate reciprocal + one Newton refinement; the refinement only
    # touches the (TM, 1) column, so per-element work stays a single multiply.
    denom = std + EPS
    inv = pl.reciprocal(denom, approx=True)
    inv = inv * (2.0 - denom * inv)

    # Hoisted parameter loads (no redundant re-broadcasts inside expressions).
    w = w_ref[...]
    b = b_ref[...]
    y = w * ((x - mean) * inv) + b
    o_ref[...] = y.astype(o_ref.dtype)


def _pick_row_tile(n, d, itemsize, tm_target, vmem_tile_budget_bytes):
    # Largest tm (multiple of 8) such that the double-buffered input + output
    # tiles (2 * 2 * tm * d * itemsize) fit the VMEM budget.
    max_tm = max(8, (vmem_tile_budget_bytes // (4 * d * itemsize)) // 8 * 8)
    tm = min(tm_target, max_tm)
    # Never tile past the (row-padded) problem size.
    tm = min(tm, pl.cdiv(n, 8) * 8)
    return max(8, (tm // 8) * 8)


def decoder_forward(x, encoder_output, src_mask, tgt_mask, weights, bias, *,
                    tm=None, vmem_tile_budget_bytes=48 * 1024 * 1024):
    """Decoder forward: identity layer stack + LayerNormalisation (Pallas).

    x: (batch, seq, d_model) float32
    encoder_output / src_mask / tgt_mask: unused (identity layer stack),
        kept for signature parity with the PyTorch module.
    weights, bias: (d_model,) float32
    """
    del encoder_output, src_mask, tgt_mask  # identity layer stack
    b, s, d = x.shape
    assert d > 1, "LayerNorm with ddof=1 requires d_model > 1"
    n = b * s

    x2d = x.reshape(n, d)
    w2d = weights.reshape(1, d)
    b2d = bias.reshape(1, d)

    itemsize = x.dtype.itemsize
    if tm is None:
        tm = _pick_row_tile(n, d, itemsize, 1024, vmem_tile_budget_bytes)
    tm = max(8, (tm // 8) * 8)
    tm = min(tm, pl.cdiv(n, 8) * 8)

    # Pad the row axis so the grid covers the array exactly; padded rows are
    # zeros (LayerNorm of a zero row is finite: (0/(0+eps)) -> 0) and sliced
    # off after the call.
    n_pad = pl.cdiv(n, tm) * tm
    if n_pad != n:
        x2d = jnp.pad(x2d, ((0, n_pad - n), (0, 0)))

    grid = (n_pad // tm,)

    # Scoped VMEM: double-buffered in + out tiles, resident w/b, plus margin.
    tile_bytes = 4 * tm * d * itemsize
    wb_bytes = 2 * 2 * d * 4
    vmem_limit = int(min(56 * 1024 * 1024,
                         max(32 * 1024 * 1024, tile_bytes + wb_bytes + (2 << 20))))

    out2d = pl.pallas_call(
        _layernorm_kernel,
        out_shape=jax.ShapeDtypeStruct((n_pad, d), x.dtype),
        grid_spec=pltpu.PrefetchScalarGridSpec(
            num_scalar_prefetch=0,
            grid=grid,
            in_specs=[
                pl.BlockSpec((tm, d), lambda i: (i, 0)),
                pl.BlockSpec((1, d), lambda i: (0, 0)),
                pl.BlockSpec((1, d), lambda i: (0, 0)),
            ],
            out_specs=pl.BlockSpec((tm, d), lambda i: (i, 0)),
        ),
        compiler_params=pltpu.CompilerParams(
            dimension_semantics=("parallel",),
            vmem_limit_bytes=vmem_limit,
        ),
    )(x2d, w2d, b2d)

    if n_pad != n:
        out2d = out2d[:n]
    return out2d.reshape(b, s, d)


def _reference(x, weights, bias):
    # Pure-JAX reference matching the PyTorch LayerNormalisation exactly.
    mean = jnp.mean(x, axis=-1, keepdims=True)
    std = jnp.std(x, axis=-1, keepdims=True, ddof=1)  # torch.std is unbiased
    return weights * ((x - mean) / (std + EPS)) + bias


if __name__ == "__main__":
    batch, seq, d_model = 2, 8, 128  # lane-dense last dim (multiple of 128)

    key = jax.random.PRNGKey(0)
    kx, ke = jax.random.split(key)
    x = jax.random.normal(kx, (batch, seq, d_model), dtype=jnp.float32)
    encoder_output = jax.random.normal(ke, (batch, seq, d_model), dtype=jnp.float32)
    src_mask = jnp.ones((batch, 1, seq, seq), dtype=jnp.float32)      # unused
    tgt_mask = jnp.tril(jnp.ones((seq, seq), jnp.float32))[None, None]  # unused

    # Deterministic parameter init per LayerNormalisation.__init__
    weights = jnp.ones((d_model,), dtype=jnp.float32)
    bias = jnp.zeros((d_model,), dtype=jnp.float32)

    out = decoder_forward(x, encoder_output, src_mask, tgt_mask, weights, bias)
    out = jax.block_until_ready(out)

    ref = _reference(x, weights, bias)
    assert out.shape == (batch, seq, d_model)
    assert jnp.allclose(out, ref, atol=1e-4, rtol=1e-4), "mismatch vs reference"

    # Exercise the non-divisible row count (padding) path as well.
    b2, s2 = 3, 5
    x_odd = jax.random.normal(jax.random.PRNGKey(1), (b2, s2, d_model), jnp.float32)
    out_odd = jax.block_until_ready(
        decoder_forward(x_odd,
                        x_odd,
                        jnp.ones((b2, 1, s2, s2), jnp.float32),
                        jnp.ones((b2, 1, s2, s2), jnp.float32),
                        weights, bias))
    ref_odd = _reference(x_odd, weights, bias)
    assert out_odd.shape == (b2, s2, d_model)
    assert jnp.allclose(out_odd, ref_odd, atol=1e-4, rtol=1e-4), "mismatch (padded path)"

    print("KERNEL_OK")
</pallas_src>

<mosaic_0001>
module attributes {stable_mosaic.version = 11 : i64} {
  func.func @_layernorm_kernel(%arg0: i32, %arg1: memref<16x128xf32, #tpu.memory_space<vmem>>, %arg2: memref<1x128xf32, #tpu.memory_space<vmem>>, %arg3: memref<1x128xf32, #tpu.memory_space<vmem>>, %arg4: memref<16x128xf32, #tpu.memory_space<vmem>>) attributes {dimension_semantics = [#tpu.dimension_semantics<parallel>], iteration_bounds = array<i64: 1>, scalar_prefetch = 0 : i64, scratch_operands = 0 : i64, tpu.core_type = #tpu.core_type<tc>, window_params = [{transform_indices = @transform_0, window_bounds = array<i64: 16, 128>}, {pipeline_mode = #tpu.pipeline_mode<synchronous>, transform_indices = @transform_1, window_bounds = array<i64: 1, 128>}, {pipeline_mode = #tpu.pipeline_mode<synchronous>, transform_indices = @transform_2, window_bounds = array<i64: 1, 128>}, {transform_indices = @transform_3, window_bounds = array<i64: 16, 128>}]} {
    %c0 = arith.constant 0 : index
    %c0_0 = arith.constant 0 : index
    %0 = vector.load %arg1[%c0, %c0_0] : memref<16x128xf32, #tpu.memory_space<vmem>>, vector<16x128xf32>
    %cst = arith.constant dense<0.000000e+00> : vector<16xf32>
    %1 = vector.multi_reduction <add>, %0, %cst [1] : vector<16x128xf32> to vector<16xf32>
    %2 = vector.shape_cast %1 : vector<16xf32> to vector<16x1xf32>
    %3 = arith.mulf %0, %0 : vector<16x128xf32>
    %cst_1 = arith.constant dense<0.000000e+00> : vector<16xf32>
    %4 = vector.multi_reduction <add>, %3, %cst_1 [1] : vector<16x128xf32> to vector<16xf32>
    %5 = vector.shape_cast %4 : vector<16xf32> to vector<16x1xf32>
    %cst_2 = arith.constant 7.812500e-03 : f32
    %6 = vector.broadcast %cst_2 : f32 to vector<16x1xf32>
    %7 = arith.mulf %2, %6 : vector<16x1xf32>
    %8 = arith.mulf %7, %7 : vector<16x1xf32>
    %cst_3 = arith.constant 1.280000e+02 : f32
    %9 = vector.broadcast %cst_3 : f32 to vector<16x1xf32>
    %10 = arith.mulf %9, %8 : vector<16x1xf32>
    %11 = arith.subf %5, %10 : vector<16x1xf32>
    %cst_4 = arith.constant 0.00787401571 : f32
    %12 = vector.broadcast %cst_4 : f32 to vector<16x1xf32>
    %13 = arith.mulf %11, %12 : vector<16x1xf32>
    %cst_5 = arith.constant 0.000000e+00 : f32
    %14 = vector.broadcast %cst_5 : f32 to vector<16x1xf32>
    %15 = arith.maximumf %13, %14 : vector<16x1xf32>
    %16 = math.sqrt %15 : vector<16x1xf32>
    %cst_6 = arith.constant 9.99999971E-10 : f32
    %17 = vector.broadcast %cst_6 : f32 to vector<16x1xf32>
    %18 = arith.addf %16, %17 : vector<16x1xf32>
    %19 = tpu.reciprocal %18 {approx = true} : vector<16x1xf32> -> vector<16x1xf32>
    %20 = arith.mulf %18, %19 : vector<16x1xf32>
    %cst_7 = arith.constant 2.000000e+00 : f32
    %21 = vector.broadcast %cst_7 : f32 to vector<16x1xf32>
    %22 = arith.subf %21, %20 : vector<16x1xf32>
    %23 = arith.mulf %19, %22 : vector<16x1xf32>
    %c0_8 = arith.constant 0 : index
    %c0_9 = arith.constant 0 : index
    %24 = vector.load %arg2[%c0_8, %c0_9] : memref<1x128xf32, #tpu.memory_space<vmem>>, vector<1x128xf32>
    %c0_10 = arith.constant 0 : index
    %c0_11 = arith.constant 0 : index
    %25 = vector.load %arg3[%c0_10, %c0_11] : memref<1x128xf32, #tpu.memory_space<vmem>>, vector<1x128xf32>
    %26 = vector.broadcast %7 : vector<16x1xf32> to vector<16x128xf32>
    %27 = arith.subf %0, %26 : vector<16x128xf32>
    %28 = vector.broadcast %23 : vector<16x1xf32> to vector<16x128xf32>
    %29 = arith.mulf %27, %28 : vector<16x128xf32>
    %30 = vector.broadcast %24 : vector<1x128xf32> to vector<16x128xf32>
    %31 = arith.mulf %30, %29 : vector<16x128xf32>
    %32 = vector.broadcast %25 : vector<1x128xf32> to vector<16x128xf32>
    %33 = arith.addf %31, %32 : vector<16x128xf32>
    %c0_12 = arith.constant 0 : index
    %c0_13 = arith.constant 0 : index
    %34 = vector.load %arg4[%c0_12, %c0_13] : memref<16x128xf32, #tpu.memory_space<vmem>>, vector<16x128xf32>
    tpu.vector_store %arg4[%c0_12, %c0_13], %33 {strides = array<i32>} : memref<16x128xf32, #tpu.memory_space<vmem>>, vector<16x128xf32>,
    return
  }
  func.func @transform_0(%arg0: i32) -> (i32, i32) {
    %c0_i32 = arith.constant 0 : i32
    %c0_i32_0 = arith.constant 0 : i32
    return %arg0, %c0_i32 : i32, i32
  }
  func.func @transform_1(%arg0: i32) -> (i32, i32) {
    %c0_i32 = arith.constant 0 : i32
    %c0_i32_0 = arith.constant 0 : i32
    %c0_i32_1 = arith.constant 0 : i32
    return %c0_i32, %c0_i32_0 : i32, i32
  }
  func.func @transform_2(%arg0: i32) -> (i32, i32) {
    %c0_i32 = arith.constant 0 : i32
    %c0_i32_0 = arith.constant 0 : i32
    %c0_i32_1 = arith.constant 0 : i32
    return %c0_i32, %c0_i32_0 : i32, i32
  }
  func.func @transform_3(%arg0: i32) -> (i32, i32) {
    %c0_i32 = arith.constant 0 : i32
    %c0_i32_0 = arith.constant 0 : i32
    return %arg0, %c0_i32 : i32, i32
  }
}

</mosaic_0001>

<bundles_post_ra>
// kernel: tpu_custom_call.1
= control target key start
LH: loop header
LB: loop body
LE: loop exit
PB: predicated region body
PF: predicated region fallthrough
CT: control target
= control target key end

     0   :  { %8 = vsyncpa [#allocation3], 0  ;;  %s283_s0 = inlined_call_operand.hbm [shape: f32[16,128], index: 0, kind: input, shape index: {}]   ;;  %s284_s1 = inlined_call_operand.hbm [shape: f32[1,128], index: 1, kind: input, shape index: {}]   ;;  %s285_s2 = inlined_call_operand.vmem [shape: f32[1,128], index: 2, kind: input, shape index: {}]   ;;  %s286_s3 = inlined_call_operand.hbm [shape: f32[16,128], index: 3, kind: output, shape index: {}]  }
   0x1   :  { %9 = vsyncpa [#allocation6], 0 }
   0x2   :  { %10 = vsyncpa [#allocation4], 0  ;;  %s15_s14 = sshll.u32 %s283_s0, 4  ;;  %s234_s15 = smov [#allocation2]   ;;  %s16_s14 = int_to_ptr.hbm [resolvable:$true] %s15_s14 }
   0x3   :  { %s17_s16 = sshll.u32 %s234_s15, 4  ;;  %s29_s19 = sshll.u32 %s284_s1, 4  ;;  %s18_s16 = int_to_ptr.vmem [resolvable:$true] %s17_s16  ;;  %s30_s19 = int_to_ptr.hbm [resolvable:$true] %s29_s19 }
   0x4   :  { %s235_s20 = smov 128   ;;  %s236_s21 = smov 8  }
   0x5   :  { %23 = dma.hbm_to_vmem [thread:$0]  %s16_s14, 256, %s18_s16, [#allocation3], %s235_s20, %s235_s20, %s236_s21  }
   0x6   :  { %s237_s22 = smov [#allocation5]  }
   0x7   :  { %s31_s23 = sshll.u32 %s237_s22, 4  ;;  %s32_s23 = int_to_ptr.vmem [resolvable:$true] %s31_s23 }
   0x8   :  { %34 = dma.hbm_to_vmem [thread:$0]  %s30_s19, 16, %s32_s23, [#allocation6]  }
   0x9   :  { %228 = dma.done.wait [#allocation3], 256  }
   0xa   :  { %229 = vsyncadd [#allocation3], 4294967040 }
   0xb   :  { %230 = dma.done.wait [#allocation6], 16  }
   0xc   :  { %231 = vsyncadd [#allocation6], 4294967280  ;;  %v45_v0 = vld [vmem:[#allocation2] sm:$0xff]  ;;  %v268_v2 = vld [vmem:[#allocation2 + $0x8] sm:$0xff]  ;;  %s238_s24 = smov [#allocation7]   ;;  %s127_s28 = sshll.u32 %s286_s3, 4  ;;  %s128_s28 = int_to_ptr.hbm [resolvable:$true] %s127_s28 }
   0xd   :  { %47 = vadd.xlane.f32.xlu0 %v45_v0  ;;  %v51_v1 = vmul.f32 %v45_v0, %v45_v0  ;;  %v52_v3 = vmul.f32 %v268_v2, %v268_v2  ;;  %v146_v47 = vld [vmem:[#allocation5] ss:$0 sm:$0xff]  ;;  %v147_v49 = vld [vmem:[%s285_s2] ss:$0 sm:$0xff]  ;;  %s125_s25 = sshll.u32 %s238_s24, 4  ;;  %s126_s25 = int_to_ptr.vmem [resolvable:$true] %s125_s25 }
   0xf   :  { %53 = vadd.xlane.f32.xlu1 %v51_v1 }
  0x15   :  { %49 = vadd.xlane.f32.xlu0 %v268_v2 }
  0x17   :  { %55 = vadd.xlane.f32.xlu1 %v52_v3 }
  0x80   :  { %v48_v4 = vpop.xlane.xlu0 %47 }
  0x81   :  { %v57_v5 = vmul.f32 0.0078125, %v48_v4 }
  0x82   :  { %v54_v6 = vpop.xlane.xlu1 %53 }
  0x83   :  { %v59_v7 = vmul.f32 %v57_v5, %v57_v5  ;;  %v105_v45 = vsub.f32 %v45_v0, %v57_v5 }
  0x85   :  { %v61_v8 = vmul.f32 128.0, %v59_v7 }
  0x87   :  { %v63_v9 = vsub.f32 %v54_v6, %v61_v8 }
  0x88   :  { %v50_v10 = vpop.xlane.xlu0 %49 }
  0x89   :  { %v65_v11 = vmul.f32 0.007874016, %v63_v9  ;;  %v58_v12 = vmul.f32 0.0078125, %v50_v10 }
  0x8a   :  { %v56_v15 = vpop.xlane.xlu1 %55 }
  0x8b   :  { %v67_v13 = vmax.f32 %v65_v11, 0.0  ;;  %v60_v14 = vmul.f32 %v58_v12, %v58_v12  ;;  %v106_v55 = vsub.f32 %v268_v2, %v58_v12 }
  0x8d   :  { %148 = vrsqrt.f32 %v67_v13  ;;  %v62_v16 = vmul.f32 128.0, %v60_v14  ;;  %vm76_vm0 = vcmp.eq.f32.partialorder %v67_v13, inf  ;;  %v79_v30 = vand.u32 2147483648, %v67_v13 }
  0x8e   :  { %vm78_vm1 = vcmp.eq.f32.partialorder %v67_v13, 0.0 }
  0x8f   :  { %v64_v17 = vsub.f32 %v56_v15, %v62_v16 }
  0x91   :  { %v66_v18 = vmul.f32 0.007874016, %v64_v17 }
  0x93   :  { %v149_v19 = vpop.eup %148  ;;  %v68_v20 = vmax.f32 %v66_v18, 0.0 }
  0x94   :  { %v70_v21 = vmul.f32 %v149_v19, %v67_v13 }
  0x95   :  { %150 = vrsqrt.f32 %v68_v20  ;;  %vm88_vm2 = vcmp.eq.f32.partialorder %v68_v20, inf  ;;  %v91_v38 = vand.u32 2147483648, %v68_v20  ;;  %vm90_vm3 = vcmp.eq.f32.partialorder %v68_v20, 0.0 }
  0x96   :  { %v71_v22 = vmul.f32 %v149_v19, %v70_v21 }
  0x98   :  { %v72_v23 = vmul.f32 0.5, %v71_v22 }
  0x9a   :  { %v73_v24 = vsub.f32 1.5, %v72_v23 }
  0x9b   :  { %v151_v25 = vpop.eup %150 }
  0x9c   :  { %v82_v26 = vmul.f32 %v151_v25, %v68_v20  ;;  %v74_v27 = vmul.f32 %v149_v19, %v73_v24 }
  0x9e   :  { %v83_v28 = vmul.f32 %v151_v25, %v82_v26  ;;  %v75_v29 = vmul.f32 %v74_v27, %v67_v13 }
  0xa0   :  { %v84_v31 = vmul.f32 0.5, %v83_v28  ;;  %v77_v32 = vsel %vm76_vm0, %v67_v13, %v75_v29 }
  0xa1   :  { %v80_v33 = vsel %vm78_vm1, %v79_v30, %v77_v32 }
  0xa2   :  { %v85_v34 = vsub.f32 1.5, %v84_v31  ;;  %v93_v35 = vadd.f32 1e-09, %v80_v33 }
  0xa4   :  { %v86_v36 = vmul.f32 %v151_v25, %v85_v34  ;;  %152 = vrcp.f32 %v93_v35 }
  0xa6   :  { %v87_v37 = vmul.f32 %v86_v36, %v68_v20 }
  0xa8   :  { %v89_v39 = vsel %vm88_vm2, %v68_v20, %v87_v37 }
  0xa9   :  { %v92_v40 = vsel %vm90_vm3, %v91_v38, %v89_v39 }
  0xaa   :  { %v153_v41 = vpop.eup %152  ;;  %v94_v42 = vadd.f32 1e-09, %v92_v40 }
  0xab   :  { %v97_v43 = vmul.f32 %v153_v41, %v93_v35 }
  0xac   :  { %154 = vrcp.f32 %v94_v42 }
  0xad   :  { %v99_v44 = vsub.f32 2.0, %v97_v43 }
  0xaf   :  { %v101_v46 = vmul.f32 %v153_v41, %v99_v44 }
  0xb1   :  { %v107_v48 = vmul.f32 %v105_v45, %v101_v46 }
  0xb2   :  { %v155_v50 = vpop.eup %154 }
  0xb3   :  { %v98_v51 = vmul.f32 %v155_v50, %v94_v42  ;;  %v112_v52 = vmul.f32 %v146_v47, %v107_v48 }
  0xb5   :  { %v100_v53 = vsub.f32 2.0, %v98_v51  ;;  %v117_v54 = vadd.f32 %v147_v49, %v112_v52 }
  0xb7   :  { %v102_v56 = vmul.f32 %v155_v50, %v100_v53  ;;  %119 = vst [vmem:[#allocation7] sm:$0xff] %v117_v54 }
  0xb9   :  { %v108_v57 = vmul.f32 %v106_v55, %v102_v56 }
  0xbb   :  { %v113_v58 = vmul.f32 %v146_v47, %v108_v57 }
  0xbd   :  { %v118_v59 = vadd.f32 %v147_v49, %v113_v58 }
  0xbf   :  { %120 = vst [vmem:[#allocation7 + $0x8] sm:$0xff] %v118_v59 }
  0xc0   :  { %133 = dma.vmem_to_hbm [thread:$0]  %s126_s25, 256, %s128_s28, [#allocation4], %s235_s20, %s235_s20, %s236_s21  }
  0xc1   :  { %232 = dma.done.wait [#allocation4], 256  }
  0xc2   :  { %233 = vsyncadd [#allocation4], 4294967040 }
  0xc3   :  { %138 = vsyncpa [#allocation3], 1 }
  0xc4   :  { %139 = vsyncpa [#allocation6], 1 }
  0xc5   :  { %140 = vsyncpa [#allocation4], 1 }

</bundles_post_ra>
